<compile_context>
chip_gen: v5e
topology: v5e:2x2
jax: 0.10.0
libtpu: 0.0.40
codegen_flags: <defaults>
</compile_context>

<pallas_src>
import functools

import numpy as np
import jax
import jax.numpy as jnp
from jax import lax
from jax.experimental import pallas as pl
from jax.experimental.pallas import tpu as pltpu


# ---------------------------------------------------------------------------
# Pass 1: accumulate score = pc @ img^T over spatial tiles, softmax, fold wp.
# Runs only for batches 1..B-1 (batch 0 never uses the attention mask).
# ---------------------------------------------------------------------------
def _score_kernel(n_total, tile_n, pc_ref, img_ref, wp_ref, attn_ref, acc_ref):
    t = pl.program_id(1)
    last = pl.num_programs(1) - 1

    @pl.when(t == 0)
    def _init():
        acc_ref[...] = jnp.zeros_like(acc_ref)

    pc = pc_ref[0]      # (C, TILE) f32
    img = img_ref[0]    # (C, TILE) f32

    def _accum(p, im):
        # (C, C) partial score: contraction over the spatial (lane) dimension.
        acc_ref[...] += lax.dot_general(p, im, (((1,), (1,)), ((), ())),
                                        preferred_element_type=jnp.float32)

    if n_total % tile_n != 0:
        # Only the last tile hangs over the end of the flattened array; gate
        # the lane masking so the other tiles stay select-free (VPU filler).
        @pl.when(t == last)
        def _ragged():
            lane = lax.broadcasted_iota(jnp.int32, (1, tile_n), 1)
            valid = (t * tile_n + lane) < n_total
            _accum(jnp.where(valid, pc, 0.0), jnp.where(valid, img, 0.0))

        @pl.when(t != last)
        def _full():
            _accum(pc, img)
    else:
        _accum(pc, img)

    @pl.when(t == last)
    def _finalize():
        c = acc_ref.shape[0]
        s = acc_ref[...] * (1.0 / (c ** 0.5))
        s = s - jnp.max(s, axis=-1, keepdims=True)
        e = jnp.exp(s)
        attn = e / jnp.sum(e, axis=-1, keepdims=True)
        # wp-fold: emit attn_p = wp @ attn so pass 2 needs only ONE
        # attention-apply matmul per tile (g = attn_p @ img + bp).
        attn_ref[0] = jnp.dot(wp_ref[...], attn,
                              preferred_element_type=jnp.float32)


# ---------------------------------------------------------------------------
# Pass 2: per-spatial-tile gating / fusion / blending.
# ---------------------------------------------------------------------------
def _fuse_kernel(c_dim, matmul_dtype,
                 pc_ref, img_ref, attnp_ref,
                 wstack_ref, bg_ref, wf1_ref, bf_ref, bp_ref,
                 fused_ref, mrow_ref):
    C = c_dim
    b = pl.program_id(0)

    pc = pc_ref[0]      # (C, TILE) f32
    img = img_ref[0]    # (C, TILE) f32

    # Occupancy masks: max over the channel (sublane) dim of (x != 0).
    pc_mask = jnp.max((pc != 0.0).astype(jnp.float32), axis=0, keepdims=True)    # (1,T)
    img_mask = jnp.max((img != 0.0).astype(jnp.float32), axis=0, keepdims=True)  # (1,T)
    pm_im = pc_mask * img_mask

    # One (4, TILE) store instead of four 1-sublane stores.  Wrapper-side
    # max-over-Z of these rows yields mask1 / mask2 / thres_map / mask_min.
    mrow_ref[0] = jnp.concatenate(
        [pc_mask, img_mask, pm_im, 2.0 * pc_mask + img_mask], axis=0)

    # multigate (wg @ pc) and the pc-side half of multifuse (wf2 @ pc) share pc
    # as RHS: stacked into one (2C, C) @ (C, T) matmul.  bf16 operands, f32 acc.
    pc_m = pc.astype(matmul_dtype)
    pre = jnp.dot(wstack_ref[...], pc_m, preferred_element_type=jnp.float32)      # (2C,T)
    gated = jnp.maximum(pre[0:C] + bg_ref[...], 0.0)                              # (C,T)
    fuse = (jnp.dot(wf1_ref[...], (gated * img).astype(matmul_dtype),
                    preferred_element_type=jnp.float32)
            + pre[C:2 * C] + bf_ref[...])                                         # (C,T)

    base = pm_im * fuse + pc * (pc_mask - pm_im)    # pc * pc_mask * (1 - img_mask)
    img_w = img_mask - pm_im                        # (1 - pc_mask) * img_mask

    @pl.when(b == 0)
    def _first_batch():
        # ImgModalFusion forces mask[0] = 1 -> skip the attention-apply matmul.
        fused_ref[0] = base + img * img_w

    @pl.when(b != 0)
    def _other_batches():
        # g = (wp @ attn) @ img + bp ; sigmoid(g) > 0.5  <=>  g > 0.
        g = jnp.dot(attnp_ref[0], img, preferred_element_type=jnp.float32) + bp_ref[...]
        imf = (g > 0.0).astype(jnp.float32)
        fused_ref[0] = base + img * (imf * img_w)


# ---------------------------------------------------------------------------
# Wrapper
# ---------------------------------------------------------------------------
def _default_tile_and_limit():
    """Generation-aware (spatial tile, scoped VMEM limit)."""
    try:
        vmem = pltpu.get_tpu_info().vmem_capacity_bytes
    except Exception:
        vmem = None
    if vmem is not None and vmem >= 96 * 1024 * 1024:
        # v5e / v6e: 128 MiB VMEM -> ~51 MiB pass-2 footprint at 32k lanes (C=64).
        return 32768, 80 * 1024 * 1024
    # v7x (64 MiB per TensorCore) or unknown: ~26 MiB at 16k lanes.
    return 16384, 44 * 1024 * 1024


def multi_modal_fusion(img_voxel, pc_dict, params, *,
                       tile_n=None, matmul_dtype=jnp.bfloat16,
                       input_buffers=None):
    pc_voxel = pc_dict['spatial_features_3d']
    B, C, Z, Y, X = pc_voxel.shape
    N = Z * Y * X
    YX = Y * X

    pc = pc_voxel.reshape(B, C, N).astype(jnp.float32)
    img = img_voxel.reshape(B, C, N).astype(jnp.float32)

    default_tile, vmem_limit = _default_tile_and_limit()
    if tile_n is None:
        tile_n = default_tile
    if N <= tile_n:
        tile = N                       # single full-extent tile
    else:
        tile = (tile_n // 128) * 128   # lane-aligned tile (multiple of 128)
        assert tile >= 128
    num_tiles = pl.cdiv(N, tile)

    wg = params['multigate_w'].astype(jnp.float32)                # (C, C)
    bg = params['multigate_b'].reshape(C, 1).astype(jnp.float32)
    wf = params['multifuse_w'].astype(jnp.float32)                # (C, 2C)
    wf1, wf2 = wf[:, :C], wf[:, C:]
    bf = params['multifuse_b'].reshape(C, 1).astype(jnp.float32)
    wp = params['proj_w'].astype(jnp.float32)                     # (C, C) f32 (threshold path)
    bp = params['proj_b'].reshape(C, 1).astype(jnp.float32)

    # Stack the two matmuls that share pc as RHS: [wg; wf2] @ pc.
    w_stack = jnp.concatenate([wg, wf2], axis=0).astype(matmul_dtype)   # (2C, C)
    wf1_m = wf1.astype(matmul_dtype)

    pipeline_mode = pl.Buffered(input_buffers) if input_buffers is not None else None

    def tile_spec(index_map):
        if pipeline_mode is None:
            return pl.BlockSpec((1, C, tile), index_map)
        return pl.BlockSpec((1, C, tile), index_map, pipeline_mode=pipeline_mode)

    def w_spec(shape):
        return pl.BlockSpec(shape, lambda b, t: (0, 0))

    # ---- pass 1: attn_p = wp @ softmax(pc @ img^T / sqrt(C)), batches 1..B-1 ----
    if B > 1:
        attn_p = pl.pallas_call(
            functools.partial(_score_kernel, N, tile),
            out_shape=jax.ShapeDtypeStruct((B, C, C), jnp.float32),
            grid_spec=pltpu.PrefetchScalarGridSpec(
                num_scalar_prefetch=0,
                grid=(B - 1, num_tiles),
                in_specs=[tile_spec(lambda b, t: (b + 1, 0, t)),
                          tile_spec(lambda b, t: (b + 1, 0, t)),
                          w_spec((C, C))],
                out_specs=pl.BlockSpec((1, C, C), lambda b, t: (b + 1, 0, 0)),
                scratch_shapes=[pltpu.VMEM((C, C), jnp.float32)]),
            compiler_params=pltpu.CompilerParams(
                dimension_semantics=("parallel", "arbitrary"),
                vmem_limit_bytes=vmem_limit),
        )(pc, img, wp)
        # Row 0 of attn_p is never written and never read (b==0 branch bypasses
        # it) -- the DMA of that block in pass 2 stays in-bounds and harmless.
    else:
        attn_p = jnp.zeros((B, C, C), jnp.float32)   # never read (b==0 only)

    # ---- pass 2: per-tile gating / fusion / blending ----
    fused, mrows = pl.pallas_call(
        functools.partial(_fuse_kernel, C, matmul_dtype),
        out_shape=(jax.ShapeDtypeStruct((B, C, N), jnp.float32),
                   jax.ShapeDtypeStruct((B, 4, N), jnp.float32)),
        grid_spec=pltpu.PrefetchScalarGridSpec(
            num_scalar_prefetch=0,
            grid=(B, num_tiles),
            in_specs=[tile_spec(lambda b, t: (b, 0, t)),
                      tile_spec(lambda b, t: (b, 0, t)),
                      pl.BlockSpec((1, C, C), lambda b, t: (b, 0, 0)),
                      w_spec((2 * C, C)), w_spec((C, 1)),
                      w_spec((C, C)), w_spec((C, 1)),
                      w_spec((C, 1))],
            out_specs=[pl.BlockSpec((1, C, tile), lambda b, t: (b, 0, t)),
                       pl.BlockSpec((1, 4, tile), lambda b, t: (b, 0, t))]),
        compiler_params=pltpu.CompilerParams(
            dimension_semantics=("parallel", "parallel"),
            vmem_limit_bytes=vmem_limit),
    )(pc, img, attn_p, w_stack, bg, wf1_m, bf, bp)

    # ---- tiny wrapper-side Z reductions (4 rows per (y,x) position) ----
    red = jnp.max(mrows.reshape(B, 4, Z, YX), axis=2)        # (B, 4, YX)
    mask1 = red[:, 0].reshape(B, 1, Y, X)
    mask2 = red[:, 1].reshape(B, 1, Y, X)
    thres_map = (0.5 * (1.0 - red[:, 2])).reshape(B, 1, Y, X)
    mask_min = (4.0 - red[:, 3]).reshape(B, 1, Y, X)

    out_dict = dict(pc_dict)
    out_dict['spatial_features'] = fused.reshape(B, C * Z, Y, X)
    return out_dict, thres_map, mask_min, jnp.stack([mask1, mask2])


# ---------------------------------------------------------------------------
# Parameter init + pure-JAX reference (ground truth for validation)
# ---------------------------------------------------------------------------
def init_params(C, key):
    ks = jax.random.split(key, 6)
    s1 = 1.0 / np.sqrt(C)
    s2 = 1.0 / np.sqrt(2 * C)
    return {
        'multigate_w': jax.random.uniform(ks[0], (C, C), jnp.float32, -s1, s1),
        'multigate_b': jax.random.uniform(ks[1], (C,), jnp.float32, -s1, s1),
        'multifuse_w': jax.random.uniform(ks[2], (C, 2 * C), jnp.float32, -s2, s2),
        'multifuse_b': jax.random.uniform(ks[3], (C,), jnp.float32, -s2, s2),
        'proj_w': jax.random.uniform(ks[4], (C, C), jnp.float32, -s1, s1),
        'proj_b': jax.random.uniform(ks[5], (C,), jnp.float32, -s1, s1),
    }


def reference(img_voxel, pc_voxel, params):
    """Pure-JAX re-implementation of the PyTorch forward."""
    P = jax.lax.Precision.HIGHEST
    B, C, Z, Y, X = pc_voxel.shape
    N = Z * Y * X
    pc = pc_voxel.reshape(B, C, N)
    img = img_voxel.reshape(B, C, N)
    pc_mask = jnp.max((pc_voxel != 0).astype(jnp.float32), axis=1, keepdims=True)
    img_mask = jnp.max((img_voxel != 0).astype(jnp.float32), axis=1, keepdims=True)
    wg, bg = params['multigate_w'], params['multigate_b']
    wf, bf = params['multifuse_w'], params['multifuse_b']
    wp, bp = params['proj_w'], params['proj_b']
    gated = jax.nn.relu(jnp.einsum('oc,bcn->bon', wg, pc, precision=P) + bg[None, :, None])
    fuse = (jnp.einsum('oc,bcn->bon', wf[:, :C], gated * img, precision=P)
            + jnp.einsum('oc,bcn->bon', wf[:, C:], pc, precision=P) + bf[None, :, None])
    score = jnp.einsum('bcn,bdn->bcd', pc, img, precision=P) / np.sqrt(C)
    attn = jax.nn.softmax(score, axis=-1)
    ctx = jnp.einsum('bcd,bdn->bcn', attn, img, precision=P)
    gate = jax.nn.sigmoid(jnp.einsum('oc,bcn->bon', wp, ctx, precision=P) + bp[None, :, None])
    imf = (gate > 0.5).astype(jnp.float32)
    imf = imf.at[0].set(1.0)
    imf = imf.reshape(B, C, Z, Y, X)
    fuse3 = fuse.reshape(B, C, Z, Y, X)
    fused = (pc_mask * img_mask * fuse3
             + pc_voxel * pc_mask * (1 - img_mask)
             + img_voxel * imf * (1 - pc_mask) * img_mask)
    thres3 = (pc_mask * img_mask * 0 + pc_mask * (1 - img_mask) * 0.5
              + (1 - pc_mask) * img_mask * 0.5 + (1 - pc_mask) * (1 - img_mask) * 0.5)
    mask3 = (pc_mask * img_mask + pc_mask * (1 - img_mask) * 2
             + (1 - pc_mask) * img_mask * 3 + (1 - pc_mask) * (1 - img_mask) * 4)
    return (fused.reshape(B, C * Z, Y, X),
            jnp.min(thres3, axis=2),
            jnp.min(mask3, axis=2),
            jnp.stack([jnp.max(pc_mask, axis=2), jnp.max(img_mask, axis=2)]))


# ---------------------------------------------------------------------------
# Demo / validation
# ---------------------------------------------------------------------------
def _run_case(B, C, Z, Y, X, tile_n, key):
    kp, ki, kpm, kim, kw = jax.random.split(key, 5)
    pc_voxel = jax.random.normal(kp, (B, C, Z, Y, X), jnp.float32)
    pc_voxel = pc_voxel * (jax.random.uniform(kpm, (B, 1, Z, Y, X)) > 0.4).astype(jnp.float32)
    img_voxel = jax.random.normal(ki, (B, C, Z, Y, X), jnp.float32)
    img_voxel = img_voxel * (jax.random.uniform(kim, (B, 1, Z, Y, X)) > 0.4).astype(jnp.float32)

    params = init_params(C, kw)
    pc_dict = {'spatial_features_3d': pc_voxel}

    out_dict, thres_map, mask_min, mask_stack = jax.block_until_ready(
        multi_modal_fusion(img_voxel, pc_dict, params, tile_n=tile_n))

    ref_sf, ref_thres, ref_maskmin, ref_stack = reference(img_voxel, pc_voxel, params)
    # fused output uses bf16 matmul operands (f32 accumulation) -> looser tol.
    np.testing.assert_allclose(np.asarray(out_dict['spatial_features']),
                               np.asarray(ref_sf), atol=5e-2, rtol=5e-2)
    np.testing.assert_allclose(np.asarray(thres_map), np.asarray(ref_thres),
                               atol=1e-5, rtol=1e-5)
    np.testing.assert_allclose(np.asarray(mask_min), np.asarray(ref_maskmin),
                               atol=1e-5, rtol=1e-5)
    np.testing.assert_allclose(np.asarray(mask_stack), np.asarray(ref_stack),
                               atol=1e-5, rtol=1e-5)


if __name__ == "__main__":
    key = jax.random.PRNGKey(0)

    # case 1: tile divides N exactly (2 spatial tiles) -> exercises the
    # accumulated-score pipeline, the batch-0 skip and the per-tile fuse pass.
    _run_case(B=2, C=8, Z=2, Y=8, X=16, tile_n=128, key=key)

    # case 2: ragged spatial extent (N = 240, tile = 128) -> exercises the
    # gated out-of-bounds lane masking and trimmed output writes.
    _run_case(B=2, C=8, Z=2, Y=6, X=20, tile_n=128, key=jax.random.fold_in(key, 1))

    # case 3: B == 1 -> pass 1 is skipped entirely (attention never used).
    _run_case(B=1, C=8, Z=2, Y=8, X=16, tile_n=128, key=jax.random.fold_in(key, 2))

    print("KERNEL_OK")
</pallas_src>

<mosaic_0001>
module attributes {stable_mosaic.version = 11 : i64} {
  func.func @_score_kernel(%arg0: i32, %arg1: i32, %arg2: memref<1x8x128xf32, #tpu.memory_space<vmem>>, %arg3: memref<1x8x128xf32, #tpu.memory_space<vmem>>, %arg4: memref<8x8xf32, #tpu.memory_space<vmem>>, %arg5: memref<1x8x8xf32, #tpu.memory_space<vmem>>, %arg6: memref<8x8xf32, #tpu.memory_space<vmem>>) attributes {dimension_semantics = [#tpu.dimension_semantics<parallel>, #tpu.dimension_semantics<arbitrary>], iteration_bounds = array<i64: 1, 2>, scalar_prefetch = 0 : i64, scratch_operands = 1 : i64, tpu.core_type = #tpu.core_type<tc>, window_params = [{transform_indices = @transform_0, window_bounds = array<i64: 1, 8, 128>}, {transform_indices = @transform_1, window_bounds = array<i64: 1, 8, 128>}, {pipeline_mode = #tpu.pipeline_mode<synchronous>, transform_indices = @transform_2, window_bounds = array<i64: 8, 8>}, {transform_indices = @transform_3, window_bounds = array<i64: 1, 8, 8>}]} {
    %c0_i32 = arith.constant 0 : i32
    %0 = arith.cmpi eq, %arg1, %c0_i32 : i32
    %1 = arith.extui %0 : i1 to i32
    %c0_i32_0 = arith.constant 0 : i32
    %2 = arith.cmpi ne, %1, %c0_i32_0 : i32
    scf.if %2 {
      %cst_11 = arith.constant 0.000000e+00 : f32
      %14 = vector.broadcast %cst_11 : f32 to vector<8x8xf32>
      %c0_12 = arith.constant 0 : index
      %c0_13 = arith.constant 0 : index
      %15 = vector.load %arg6[%c0_12, %c0_13] : memref<8x8xf32, #tpu.memory_space<vmem>>, vector<8x8xf32>
      tpu.vector_store %arg6[%c0_12, %c0_13], %14 {strides = array<i32>} : memref<8x8xf32, #tpu.memory_space<vmem>>, vector<8x8xf32>,
    } else {
    }
    %c0 = arith.constant 0 : index
    %c0_1 = arith.constant 0 : index
    %c0_2 = arith.constant 0 : index
    %3 = vector.load %arg2[%c0, %c0_1, %c0_2] : memref<1x8x128xf32, #tpu.memory_space<vmem>>, vector<1x8x128xf32>
    %4 = vector.shape_cast %3 : vector<1x8x128xf32> to vector<8x128xf32>
    %c0_3 = arith.constant 0 : index
    %c0_4 = arith.constant 0 : index
    %c0_5 = arith.constant 0 : index
    %5 = vector.load %arg3[%c0_3, %c0_4, %c0_5] : memref<1x8x128xf32, #tpu.memory_space<vmem>>, vector<1x8x128xf32>
    %6 = vector.shape_cast %5 : vector<1x8x128xf32> to vector<8x128xf32>
    %c0_6 = arith.constant 0 : index
    %c0_7 = arith.constant 0 : index
    %7 = vector.load %arg6[%c0_6, %c0_7] : memref<8x8xf32, #tpu.memory_space<vmem>>, vector<8x8xf32>
    %cst = arith.constant dense<0.000000e+00> : vector<8x8xf32>
    %8 = tpu.matmul %4, %6, %cst {dimension_numbers = #tpu.dot_dimension_numbers<[1], [1], [0], [0], [0, 0, 1, 0], [], []>} : vector<8x128xf32>, vector<8x128xf32>, vector<8x8xf32> -> vector<8x8xf32>
    %9 = arith.addf %7, %8 : vector<8x8xf32>
    %c0_8 = arith.constant 0 : index
    %c0_9 = arith.constant 0 : index
    %10 = vector.load %arg6[%c0_8, %c0_9] : memref<8x8xf32, #tpu.memory_space<vmem>>, vector<8x8xf32>
    tpu.vector_store %arg6[%c0_8, %c0_9], %9 {strides = array<i32>} : memref<8x8xf32, #tpu.memory_space<vmem>>, vector<8x8xf32>,
    %c1_i32 = arith.constant 1 : i32
    %11 = arith.cmpi eq, %arg1, %c1_i32 : i32
    %12 = arith.extui %11 : i1 to i32
    %c0_i32_10 = arith.constant 0 : i32
    %13 = arith.cmpi ne, %12, %c0_i32_10 : i32
    scf.if %13 {
      %c0_11 = arith.constant 0 : index
      %c0_12 = arith.constant 0 : index
      %14 = vector.load %arg6[%c0_11, %c0_12] : memref<8x8xf32, #tpu.memory_space<vmem>>, vector<8x8xf32>
      %cst_13 = arith.constant 0.353553385 : f32
      %15 = vector.broadcast %cst_13 : f32 to vector<8x8xf32>
      %16 = arith.mulf %14, %15 : vector<8x8xf32>
      %cst_14 = arith.constant dense<0xFF800000> : vector<8xf32>
      %17 = vector.multi_reduction <maximumf>, %16, %cst_14 [1] : vector<8x8xf32> to vector<8xf32>
      %18 = vector.shape_cast %17 : vector<8xf32> to vector<8x1xf32>
      %19 = vector.broadcast %18 : vector<8x1xf32> to vector<8x8xf32>
      %20 = arith.subf %16, %19 : vector<8x8xf32>
      %21 = math.exp %20 : vector<8x8xf32>
      %cst_15 = arith.constant dense<0.000000e+00> : vector<8xf32>
      %22 = vector.multi_reduction <add>, %21, %cst_15 [1] : vector<8x8xf32> to vector<8xf32>
      %23 = vector.shape_cast %22 : vector<8xf32> to vector<8x1xf32>
      %24 = vector.broadcast %23 : vector<8x1xf32> to vector<8x8xf32>
      %25 = arith.divf %21, %24 : vector<8x8xf32>
      %c0_16 = arith.constant 0 : index
      %c0_17 = arith.constant 0 : index
      %26 = vector.load %arg4[%c0_16, %c0_17] : memref<8x8xf32, #tpu.memory_space<vmem>>, vector<8x8xf32>
      %cst_18 = arith.constant dense<0.000000e+00> : vector<8x8xf32>
      %27 = tpu.matmul %26, %25, %cst_18 {dimension_numbers = #tpu.dot_dimension_numbers<[1], [0], [0], [1], [0, 0, 1, 1], [], []>} : vector<8x8xf32>, vector<8x8xf32>, vector<8x8xf32> -> vector<8x8xf32>
      %c0_19 = arith.constant 0 : index
      %c0_20 = arith.constant 0 : index
      %c0_21 = arith.constant 0 : index
      %28 = vector.load %arg5[%c0_19, %c0_20, %c0_21] : memref<1x8x8xf32, #tpu.memory_space<vmem>>, vector<1x8x8xf32>
      %29 = vector.shape_cast %28 : vector<1x8x8xf32> to vector<8x8xf32>
      %30 = vector.shape_cast %27 : vector<8x8xf32> to vector<1x8x8xf32>
      tpu.vector_store %arg5[%c0_19, %c0_20, %c0_21], %30 {strides = array<i32>} : memref<1x8x8xf32, #tpu.memory_space<vmem>>, vector<1x8x8xf32>,
    } else {
    }
    return
  }
  func.func @transform_0(%arg0: i32, %arg1: i32) -> (i32, i32, i32) {
    %c1_i32 = arith.constant 1 : i32
    %0 = arith.addi %arg0, %c1_i32 : i32
    %c0_i32 = arith.constant 0 : i32
    %c0_i32_0 = arith.constant 0 : i32
    return %0, %c0_i32, %arg1 : i32, i32, i32
  }
  func.func @transform_1(%arg0: i32, %arg1: i32) -> (i32, i32, i32) {
    %c1_i32 = arith.constant 1 : i32
    %0 = arith.addi %arg0, %c1_i32 : i32
    %c0_i32 = arith.constant 0 : i32
    %c0_i32_0 = arith.constant 0 : i32
    return %0, %c0_i32, %arg1 : i32, i32, i32
  }
  func.func @transform_2(%arg0: i32, %arg1: i32) -> (i32, i32) {
    %c0_i32 = arith.constant 0 : i32
    %c0_i32_0 = arith.constant 0 : i32
    %c0_i32_1 = arith.constant 0 : i32
    return %c0_i32, %c0_i32_0 : i32, i32
  }
  func.func @transform_3(%arg0: i32, %arg1: i32) -> (i32, i32, i32) {
    %c1_i32 = arith.constant 1 : i32
    %0 = arith.addi %arg0, %c1_i32 : i32
    %c0_i32 = arith.constant 0 : i32
    %c0_i32_0 = arith.constant 0 : i32
    %c0_i32_1 = arith.constant 0 : i32
    return %0, %c0_i32, %c0_i32_0 : i32, i32, i32
  }
}

</mosaic_0001>

<bundles_post_ra>
// kernel: tpu_custom_call.1
= control target key start
LH: loop header
LB: loop body
LE: loop exit
PB: predicated region body
PF: predicated region fallthrough
CT: control target
= control target key end

     0   :  { %s898_s0 = inlined_call_operand.hbm [shape: f32[2,8,256], index: 0, kind: input, shape index: {}]   ;;  %s899_s1 = inlined_call_operand.hbm [shape: f32[2,8,256], index: 1, kind: input, shape index: {}]   ;;  %s900_s2 = inlined_call_operand.hbm [shape: f32[8,8], index: 2, kind: input, shape index: {}]   ;;  %s901_s3 = inlined_call_operand.hbm [shape: f32[2,8,8], index: 3, kind: output, shape index: {}]  }
   0x1   :  { %902 = sst [smem:[#allocation14_spill]] %s900_s2 }
   0x2   :  { %8 = vsyncpa [#allocation4], 0 }
   0x3   :  { %10 = vsyncpa [#allocation4 + $0x1], 0 }
   0x4   :  { %11 = vsyncpa [#allocation7], 0 }
   0x5   :  { %13 = vsyncpa [#allocation7 + $0x1], 0 }
   0x6   :  { %14 = vsyncpa [#allocation5], 0  ;;  %s771_s12 = smov 0   ;;  %s773_s13 = smov 0  }
   0x7   :  { %s775_s14 = smov 0   ;;  %s777_s15 = smov 0  }
   0x8   :  { %s779_s16 = smov 0   ;;  %s781_s17 = smov 0  }
   0x9 LB: > { %s800_s18 = sadd.s32 4294967295, %s746_s17   ;;  %p56_p0 = scmp.ne.s32.totalorder %s730_s13, %s726_s12  ;;  %s746_s17 = sphi %s781_s17, %s20_s17   ;;  %s742_s16 = sphi %s779_s16, %s911_s16   ;;  %s738_s15 = sphi %s777_s15, %s910_s15   ;;  %s734_s14 = sphi %s775_s14, %s909_s14   ;;  %s730_s13 = sphi %s773_s13, %s908_s13   ;;  %s726_s12 = sphi %s771_s12, %s907_s12  }
   0xa   : > { %p57_p1 = scmp.eq.s32.totalorder %s800_s18, 0  ;;  %p465_p2 = scmp.ge.s32.totalorder %s746_s17, 1 }
   0xb   : > { %p146_p3 = scmp.lt.s32.totalorder %s746_s17, 3  ;;  %s904_s2 = sld [smem:[#allocation14_spill]] }
   0xc   : > { %p808_p4 = por %p57_p1, %p56_p0  ;;  %s748_s24 = smov [#allocation8]  }
   0xd   : > { %p815_p5 = pnand %p465_p2, %p146_p3  ;;  %s160_s25 = sshll.u32 %s748_s24, 4  ;;  %s161_s25 = int_to_ptr.vmem [resolvable:$true] %s160_s25 }
   0xe   : > { %s29_s26 = sadd.s32 1, %s742_s16  ;;  %s43_s27 = sadd.s32 1, %s734_s14 }
   0xf   : > { %p495_p6 = pneg %p815_p5  ;;  %p30_p8 = scmp.ge.s32.totalorder %s29_s26, 2 }
  0x10   : > { %p50_p9 = scmp.ne.s32.totalorder %s734_s14, %s730_s13  ;;  %p51_p10 = scmp.eq.s32.totalorder %s746_s17, 0 }
  0x11   : > { %s158_s22 = sshll.u32 %s904_s2, 4  ;;  %p496_p7 = pnand %p495_p6, %p57_p1  ;;  %s159_s22 = int_to_ptr.hbm [resolvable:$true] %s158_s22 }
  0x12   : > { %s913_s26 = smov (%p30_p8, %s29_s26), 0  ;;  %p830_p11 = por %p51_p10, %p50_p9 }
  0x13   : > { %498 = dma.hbm_to_vmem [thread:$0]  (!%p496_p7), %s159_s22, 128, %s161_s25, [#allocation7]  }
  0x14   : > { %p507_p12 = scmp.lt.s32.totalorder %s746_s17, 2  ;;  %s39_s29 = ssub.s32 %s742_s16, %s913_s26 }
  0x15   : > { %s171_s30 = sand.u32 1, %s734_s14   ;;  %p41_p13 = scmp.eq.s32.totalorder %s39_s29, 0 }
  0x16   : > { %s468_s4 = sshll.u32 %s171_s30, 3  ;;  %s469_s5 = sshll.u32 %s742_s16, 3 }
  0x17   : > { %s840_s6 = scalar_select %p41_p13, %s734_s14, %s43_s27  }
  0x18   : > { %s392_s9 = scalar_lea.hbm %s898_s0, %s469_s5  ;;  %s175_s11 = scalar_lea.vmem [#allocation3], %s468_s4 }
  0x19   : > { %s393_s10 = scalar_lea.hbm %s392_s9, 16  ;;  %s186_s12 = sshll.u32 %s175_s11, 4  ;;  %s187_s12 = int_to_ptr.vmem [resolvable:$true] %s186_s12 }
  0x1a   : > { %s184_s20 = sshll.u32 %s393_s10, 4  ;;  %p500_p0 = pnand %p507_p12, %p830_p11  ;;  %s185_s20 = int_to_ptr.hbm [resolvable:$true] %s184_s20 }
  0x1b   : > { %s400_s24 = scalar_lea.hbm %s899_s1, %s469_s5  ;;  %s193_s25 = sand.u32 1, %s746_s17  }
  0x1c   : > { %s172_s27 = scalar_lea.sflag [#allocation4], %s171_s30  ;;  %s401_s29 = scalar_lea.hbm %s400_s24, 16 }
  0x1d   : > { %502 = dma.hbm_to_vmem [thread:$0]  (!%p500_p0), %s185_s20, 128, %s187_s12, %s172_s27  }
  0x1e   : > { %s206_s2 = sshll.u32 %s401_s29, 4  ;;  %s197_s7 = scalar_lea.vmem [#allocation6], %s468_s4  ;;  %s207_s2 = int_to_ptr.hbm [resolvable:$true] %s206_s2 }
  0x1f   : > { %s208_s8 = sshll.u32 %s197_s7, 4  ;;  %s194_s9 = scalar_lea.sflag [#allocation7], %s193_s25  ;;  %s209_s8 = int_to_ptr.vmem [resolvable:$true] %s208_s8 }
  0x20   : > { %505 = dma.hbm_to_vmem [thread:$0]  (!%p500_p0), %s207_s2, 128, %s209_s8, %s194_s9  }
  0x21   : > { %217 = sbr.rel (%p815_p5) target bundleno = 593 (0x251), region = 32  ;;  %s219_s28 = sand.u32 (!%p815_p5), 1, %s730_s13  }
  0x22   : > { %s473_s10 = sshll.u32 (!%p815_p5), %s219_s28, 3  ;;  %s220_s11 = scalar_lea.sflag (!%p815_p5), [#allocation4], %s219_s28 }
  0x23   : > { %s223_s5 = scalar_lea.vmem (!%p815_p5), [#allocation3], %s473_s10 }
  0x26   : > { %709 = dma.done.wait (%p808_p4), %s220_s11, 128  }
  0x27   : > { %711 = vsyncadd (%p808_p4), %s220_s11, 4294967168  ;;  %s229_s30 = sand.u32 1, %s800_s18   ;;  %s233_s12 = scalar_lea.vmem [#allocation6], %s473_s10 }
  0x28   : > { %s230_s4 = scalar_lea.sflag [#allocation7], %s229_s30 }
  0x29   : > { %713 = dma.done.wait (%p808_p4), %s230_s4, 128  }
  0x2a   : > { %715 = vsyncadd (%p808_p4), %s230_s4, 4294967168 }
  0x2b   : > { %717 = dma.done.wait (%p57_p1), [#allocation7], 128  }
  0x2c   : > { %719 = vsyncadd (%p57_p1), [#allocation7], 4294967168  ;;  %p476_p2 = scmp.ne.s32.totalorder %s738_s15, 0 }
  0x2e   : > { %268 = sbr.rel (%p476_p2) target bundleno = 53 (0x35), region = 48 }
  0x33   : > { %vm269_vm0 = vcmask 64512   ;;  %v749_v0 = vmov 0.0  }
  0x34   : > { %270 = vst.msk [vmem:[#allocation2] sm:$0xff] %vm269_vm0, %v749_v0 }
  0x35 PF: > { %v272_v1 = vld [vmem:[%s233_s12] sm:$0xff]  ;;  %v271_v2 = vld [vmem:[%s223_s5] sm:$0xff]  ;;  %vm295_vm1 = vcmask 64512   ;;  %p477_p3 = scmp.ne.s32.totalorder %s738_s15, 1 }
  0x36   : > { %289 = vmatpush.xpose.msra.mxu0 %v272_v1 }
  0x39   : > { %290 = vmatmul.f32.vlgmr.msra.gmra.mxu0 %v271_v2 }
  0x3b   : > { %v273_v3 = vld [vmem:[#allocation2] sm:$0xff] }
  0xb5   : > { %300 = sbr.rel (%p477_p3) target bundleno = 587 (0x24b), region = 52 }
  0xb6   : > { %v291_v4 = vpop.f32.mrf.mxu0 }
  0xb7   : > { %v294_v5 = vadd.f32 %v291_v4, %v273_v3 }
  0xb9   : > { %296 = vst.msk [vmem:[#allocation2] sm:$0xff] %vm295_vm1, %v294_v5 }
  0xba   : > { %v327_v26 = vld [vmem:[#allocation8] sm:$0xff] }
  0xc0   : > { %v301_v6 = vld [vmem:[#allocation2] sm:$0xff] }
  0xc1   : > { %v302_v7 = vmul.f32 0.35355338, %v301_v6 }
  0xc3   : > { %v303_v8 = vsel %vm295_vm1, %v302_v7, -inf }
  0xc4   : > { %304 = vmax.xlane.f32.xlu0 %v303_v8 }
 0x137   : > { %v305_v9 = vpop.xlane.xlu0 %304 }
 0x138   : > { %v306_v10 = vsub.f32 %v302_v7, %v305_v9 }
 0x13a   : > { %v307_v11 = vmul.f32 1.442695, %v306_v10 }
 0x13c   : > { %562 = vpow2.f32 %v307_v11 }
 0x142   : > { %v563_v12 = vpop.eup %562 }
 0x143   : > { %v309_v13 = vsel %vm295_vm1, %v563_v12, 0.0 }
 0x144   : > { %310 = vadd.xlane.f32.xlu0 %v309_v13 }
 0x1b7   : > { %v311_v14 = vpop.xlane.xlu0 %310 }
 0x1b8   : > { %564 = vrcp.f32 %v311_v14  ;;  %v323_v18 = vand.u32 2147483648, %v311_v14  ;;  %v321_v20 = vand.u32 2147483647, %v311_v14  ;;  %vm317_vm3 = vweird.f32 %v311_v14 }
 0x1ba   : > { %v324_v22 = vor.u32 1.1754944e-38, %v323_v18  ;;  %vm322_vm5 = vcmp.eq.f32.partialorder %v321_v20, 8.507059e+37 }
 0x1be   : > { %v565_v15 = vpop.eup %564 }
 0x1bf   : > { %v313_v16 = vmul.f32 %v565_v15, %v311_v14  ;;  %vm318_vm2 = vweird.f32 %v565_v15 }
 0x1c0   : > { %vm319_vm4 = vmor %vm317_vm3, %vm318_vm2 }
 0x1c1   : > { %v314_v17 = vsub.f32 1.0, %v313_v16 }
 0x1c3   : > { %v315_v19 = vmul.f32 %v565_v15, %v314_v17 }
 0x1c5   : > { %v316_v21 = vadd.f32 %v565_v15, %v315_v19 }
 0x1c7   : > { %v320_v23 = vsel %vm319_vm4, %v565_v15, %v316_v21 }
 0x1c8   : > { %v325_v24 = vsel %vm322_vm5, %v324_v22, %v320_v23 }
 0x1c9   : > { %v326_v25 = vmul.f32 %v563_v12, %v325_v24 }
 0x1cb   : > { %346 = vmatpush.msra.mxu0 %v326_v25 }
 0x1cc   : > { %478 = vmatmul.msk.f32.vlgmr.msra.gmra.mxu0 %vm295_vm1, %v327_v26 }
 0x249   : > { %v348_v27 = vpop.f32.mrf.mxu0 }
 0x24a   : > { %351 = vst.msk [vmem:[#allocation9] sm:$0xff] %vm295_vm1, %v348_v27 }
 0x24b PF: > { %p509_p1 = scmp.eq.s32.totalorder %s800_s18, 1  ;;  %s416_s19 = scalar_lea.hbm %s901_s3, 8 }
 0x24c   : > { %s750_s23 = smov [#allocation9]   ;;  %s363_s21 = sshll.u32 %s416_s19, 4  ;;  %s364_s21 = int_to_ptr.hbm [resolvable:$true] %s363_s21 }
 0x24d   : > { %s361_s20 = sshll.u32 %s750_s23, 4  ;;  %s362_s20 = int_to_ptr.vmem [resolvable:$true] %s361_s20 }
 0x24e   : > { %492 = dma.vmem_to_hbm [thread:$0]  (%p509_p1), %s362_s20, 128, %s364_s21, [#allocation5]  }
 0x24f   : > { %721 = dma.done.wait (%p509_p1), [#allocation5], 128  }
 0x250   : > { %723 = vsyncadd (%p509_p1), [#allocation5], 4294967168 }
 0x251 PF: > { %s20_s17 = sadd.s32 1, %s746_s17   ;;  %s907_s12 = smov %s730_s13 }
 0x252   : > { %p17_p4 = scmp.ge.s32.totalorder %s20_s17, 4   ;;  %s908_s13 = smov %s734_s14 }
 0x253   : > { %s909_s14 = smov %s840_s6  ;;  %s910_s15 = smov %s742_s16 }
 0x254   : > { %s911_s16 = smov %s913_s26  ;;  %19 = sbr.rel (!%p17_p4) target bundleno = 9 (0x9), region = 95 }
 0x259   :  { %377 = vsyncpa [#allocation4], 1 }
 0x25a   :  { %379 = vsyncpa [#allocation4 + $0x1], 1 }
 0x25b   :  { %380 = vsyncpa [#allocation7], 1 }
 0x25c   :  { %382 = vsyncpa [#allocation7 + $0x1], 1 }
 0x25d   :  { %383 = vsyncpa [#allocation5], 1 }
 0x25e   :  { %385 = vsyncpa [#allocation5 + $0x1], 1 }

</bundles_post_ra>
